<compile_context>
chip_gen: v6e
topology: v6e:2x2x1
jax: 0.10.0
libtpu: 0.0.40
codegen_flags: <defaults>
</compile_context>

<pallas_src>
import functools
import numpy as np

import jax
import jax.numpy as jnp
from jax.experimental import pallas as pl
from jax.experimental.pallas import tpu as pltpu


# ----------------------------------------------------------------------------
# Kernel 1: fused pretrans (one tall edge matmul + per-node base) + PNA
#           aggregation (mean/max/min/std over K in-edges) + posttrans
#           (scalers folded into the weights) + per-tile BN partial stats.
# ----------------------------------------------------------------------------
def _pna_fused_kernel(
    h_ref, srcef_ref,
    wsrcef_ref, bpre_ref,
    wdsth_ref, wagg_ref, bpost_ref,
    out_ref, stats_ref,
    *, K, indim, eps, n_valid, tile_rows, need_mask,
):
    f32 = jnp.float32
    tile = tile_rows

    # Fused per-node dot: h @ [w_dst | w_h] -> (tile, indim + outdim), computed ONCE per node.
    dsth = jnp.dot(h_ref[...], wdsth_ref[...], preferred_element_type=f32)
    base = dsth[:, :indim] + bpre_ref[...]            # pretrans dst term + bias   (tile, indim)
    h_post = dsth[:, indim:]                          # posttrans h term           (tile, outdim)

    # One tall edge matmul: (K*tile, indim+edge_dim) @ (indim+edge_dim, indim).
    srcef = srcef_ref[...].reshape(K * tile, -1)
    msgs = jnp.dot(srcef, wsrcef_ref[...], preferred_element_type=f32)   # (K*tile, indim)

    # Online mean/max/min/std over the K in-neighbours (static unrolled, purely elementwise).
    inv_k = 1.0 / K
    e0 = jnp.maximum(msgs[0:tile, :] + base, 0.0)     # pretrans ReLU
    s, ss, mx, mn = e0, e0 * e0, e0, e0
    for k in range(1, K):
        ek = jnp.maximum(msgs[k * tile:(k + 1) * tile, :] + base, 0.0)
        s = s + ek
        ss = ss + ek * ek
        mx = jnp.maximum(mx, ek)
        mn = jnp.minimum(mn, ek)
    mean = s * inv_k
    var = jnp.maximum(ss * inv_k - mean * mean, 0.0)
    std = jnp.sqrt(var + eps)

    # (tile, 4*indim) lane-dense aggregate -> single MXU dot (scalers folded into wagg).
    agg = jnp.concatenate([mean, mx, mn, std], axis=1)
    out = h_post + jnp.dot(agg.astype(wagg_ref.dtype), wagg_ref[...],
                           preferred_element_type=f32)
    out = jnp.maximum(out + bpost_ref[...], 0.0)      # posttrans ReLU
    out_ref[...] = out.astype(out_ref.dtype)

    # Per-tile BatchNorm partial stats (no resident accumulator -> grid stays "parallel").
    if need_mask:  # static: only when N was padded up to the tile
        row = pl.program_id(0) * tile + jax.lax.broadcasted_iota(jnp.int32, out.shape, 0)
        outm = jnp.where(row < n_valid, out, 0.0)
    else:
        outm = out
    sum1 = jnp.sum(outm, axis=0, keepdims=True)                 # (1, outdim)
    sum2 = jnp.sum(outm * outm, axis=0, keepdims=True)          # (1, outdim)
    stats_ref[...] = jnp.concatenate([sum1, sum2], axis=0)[None, :, :]   # (1, 2, outdim)


# ----------------------------------------------------------------------------
# Kernel 2: BatchNorm1d apply — pure FMA with wrapper-folded scale/shift.
# ----------------------------------------------------------------------------
def _bn_apply_kernel(x_ref, scale_ref, shift_ref, o_ref):
    o_ref[...] = (x_ref[...] * scale_ref[...] + shift_ref[...]).astype(o_ref.dtype)


# ----------------------------------------------------------------------------
# Parameter preparation: split pretrans weights by operand, fold the degree
# scalers into the posttrans weights, optionally lane-pack several towers.
# ----------------------------------------------------------------------------
def prepare_tower(params, indim, amp_scale, att_scale):
    """Split/fold one PNATower's raw weights (PyTorch layout) for the fused kernel."""
    w_pre = params["w_pre"]                       # (2*indim + edge_dim, indim)
    w_post = params["w_post"]                     # (13*indim, outdim)
    w_agg = (w_post[indim:5 * indim]
             + amp_scale * w_post[5 * indim:9 * indim]
             + att_scale * w_post[9 * indim:13 * indim])      # (4*indim, outdim)
    return dict(
        w_src=w_pre[:indim], w_dst=w_pre[indim:2 * indim], w_ef=w_pre[2 * indim:],
        b_pre=params["b_pre"],
        w_h=w_post[:indim], w_agg=w_agg, b_post=params["b_post"],
        bn_gamma=params["bn_gamma"], bn_beta=params["bn_beta"],
    )


def pack_towers(towers):
    """Lane-pack T prepared towers along the feature axis (block-diagonal weights).

    The packed forward equals the per-tower forwards concatenated on the feature axis;
    with T*32 >= 128 the kernel runs lane-dense (full vregs, unmasked stores).
    """
    T = len(towers)
    indim = towers[0]["w_src"].shape[0]

    def bdiag(mats):
        a, b = mats[0].shape
        out = jnp.zeros((T * a, T * b), mats[0].dtype)
        for t, m in enumerate(mats):
            out = out.at[t * a:(t + 1) * a, t * b:(t + 1) * b].set(m)
        return out

    # w_agg rows are ordered [mean | max | min | std]; block-diagonalize per aggregator.
    w_agg = jnp.concatenate(
        [bdiag([tw["w_agg"][a * indim:(a + 1) * indim] for tw in towers]) for a in range(4)],
        axis=0)
    return dict(
        w_src=bdiag([tw["w_src"] for tw in towers]),
        w_dst=bdiag([tw["w_dst"] for tw in towers]),
        w_ef=jnp.concatenate([tw["w_ef"] for tw in towers], axis=1),
        b_pre=jnp.concatenate([tw["b_pre"] for tw in towers]),
        w_h=bdiag([tw["w_h"] for tw in towers]),
        w_agg=w_agg,
        b_post=jnp.concatenate([tw["b_post"] for tw in towers]),
        bn_gamma=jnp.concatenate([tw["bn_gamma"] for tw in towers]),
        bn_beta=jnp.concatenate([tw["bn_beta"] for tw in towers]),
    )


def _node_tiling(n, target, K, c_in, indim, outdim, in_itemsize,
                 vmem_budget=20 * 1024 * 1024):
    """Node tile (multiple of 8, <= target, shrunk to a VMEM budget) + padded row count."""
    target = max(8, (target // 8) * 8)

    def footprint(t):
        # double-buffered blocks + rough in-kernel temporaries
        return (2 * t * indim * in_itemsize
                + 2 * K * t * c_in * in_itemsize
                + 4 * t * outdim * 4
                + (K + 14) * t * indim * 4)

    while target > 64 and footprint(target) > vmem_budget:
        target //= 2
    if n <= target:
        tile = ((n + 7) // 8) * 8
        return tile, tile
    return target, ((n + target - 1) // target) * target


# ----------------------------------------------------------------------------
# Forward pass.
# ----------------------------------------------------------------------------
def pna_forward(h, ef, src_idx, prep, *, K, eps_agg=1e-5, eps_bn=1e-5,
                node_tile=1024, matmul_dtype=jnp.bfloat16):
    """Fused PNATower forward from prepared (split/folded, possibly lane-packed) weights."""
    N, indim = h.shape
    E, edge_dim = ef.shape
    outdim = prep["w_h"].shape[1]
    assert E == N * K and src_idx.shape == (N, K)
    c_in = indim + edge_dim

    # Weights: concatenate by operand and cast ONCE in the wrapper (bf16 -> ~2-4x MXU).
    w_srcef = jnp.concatenate([prep["w_src"], prep["w_ef"]], axis=0).astype(matmul_dtype)
    w_dsth = jnp.concatenate([prep["w_dst"], prep["w_h"]], axis=1).astype(matmul_dtype)
    w_agg = prep["w_agg"].astype(matmul_dtype)
    b_pre = prep["b_pre"].reshape(1, indim).astype(jnp.float32)
    b_post = prep["b_post"].reshape(1, outdim).astype(jnp.float32)

    # Activations cast before the gather so the dominant (K, N, C) stream is half-width (bf16).
    h_c = h.astype(matmul_dtype)
    ef_c = ef.astype(matmul_dtype)

    # Glue: edge e = n*K + k has destination node n; gather src features and edge features
    # into ONE (K, N, indim+edge_dim) buffer so the in-kernel reduce over K is elementwise
    # and the pretrans is a single tall dot.
    src_g = jnp.take(h_c, src_idx.T, axis=0)                              # (K, N, indim)
    ef_t = jnp.transpose(ef_c.reshape(N, K, edge_dim), (1, 0, 2))         # (K, N, edge_dim)
    srcef = jnp.concatenate([src_g, ef_t], axis=-1)                       # (K, N, c_in)

    tile, n_pad = _node_tiling(N, node_tile, K, c_in, indim, outdim,
                               jnp.dtype(matmul_dtype).itemsize)
    need_mask = n_pad != N
    if need_mask:
        pad = n_pad - N
        h_c = jnp.pad(h_c, ((0, pad), (0, 0)))
        srcef = jnp.pad(srcef, ((0, 0), (0, pad), (0, 0)))

    grid_n = n_pad // tile
    const = lambda i: (0, 0)

    out_pre_bn, part_stats = pl.pallas_call(
        functools.partial(_pna_fused_kernel, K=K, indim=indim, eps=eps_agg,
                          n_valid=N, tile_rows=tile, need_mask=need_mask),
        out_shape=(jax.ShapeDtypeStruct((n_pad, outdim), jnp.float32),
                   jax.ShapeDtypeStruct((grid_n, 2, outdim), jnp.float32)),
        grid=(grid_n,),
        in_specs=[
            pl.BlockSpec((tile, indim), lambda i: (i, 0)),           # h
            pl.BlockSpec((K, tile, c_in), lambda i: (0, i, 0)),      # gathered src || ef
            pl.BlockSpec((c_in, indim), const),                      # [w_src; w_ef]
            pl.BlockSpec((1, indim), const),                         # b_pre
            pl.BlockSpec((indim, indim + outdim), const),            # [w_dst | w_h]
            pl.BlockSpec((4 * indim, outdim), const),                # folded w_agg
            pl.BlockSpec((1, outdim), const),                        # b_post
        ],
        out_specs=(
            pl.BlockSpec((tile, outdim), lambda i: (i, 0)),          # pre-BN activations
            pl.BlockSpec((1, 2, outdim), lambda i: (i, 0, 0)),       # per-tile BN partial stats
        ),
        compiler_params=pltpu.CompilerParams(
            dimension_semantics=("parallel",),                       # no resident accumulator
            vmem_limit_bytes=32 * 1024 * 1024),
    )(h_c, srcef, w_srcef, b_pre, w_dsth, w_agg, b_post)

    # BatchNorm1d (training-mode) fold: tiny (grid,2,outdim) -> per-channel scale/shift.
    stats = jnp.sum(part_stats, axis=0)                              # (2, outdim)
    mean = stats[0] / N
    var = jnp.maximum(stats[1] / N - mean * mean, 0.0)               # biased batch variance
    scale = prep["bn_gamma"].astype(jnp.float32) * jax.lax.rsqrt(var + eps_bn)
    shift = prep["bn_beta"].astype(jnp.float32) - mean * scale
    scale = scale.reshape(1, outdim)
    shift = shift.reshape(1, outdim)

    # BN apply (pure FMA), output aliased onto the pre-BN buffer. Dropout is eval-mode identity.
    out = pl.pallas_call(
        _bn_apply_kernel,
        out_shape=jax.ShapeDtypeStruct((n_pad, outdim), jnp.float32),
        grid=(grid_n,),
        in_specs=[
            pl.BlockSpec((tile, outdim), lambda i: (i, 0)),
            pl.BlockSpec((1, outdim), const),
            pl.BlockSpec((1, outdim), const),
        ],
        out_specs=pl.BlockSpec((tile, outdim), lambda i: (i, 0)),
        input_output_aliases={0: 0},
        compiler_params=pltpu.CompilerParams(dimension_semantics=("parallel",)),
    )(out_pre_bn, scale, shift)

    return out[:N] if need_mask else out


def pna_tower_forward(h, ef, src_idx, params, *, K, amp_scale, att_scale, **kwargs):
    """Single PNATower forward (matches the PyTorch module's call semantics)."""
    prep = prepare_tower(params, h.shape[1], amp_scale, att_scale)
    return pna_forward(h, ef, src_idx, prep, K=K, **kwargs)


# ----------------------------------------------------------------------------
# Pure-JAX reference (mirrors the PyTorch module's computation order).
# ----------------------------------------------------------------------------
def pna_tower_reference(h, ef, src_idx, params, *, K, amp_scale, att_scale, eps=1e-5):
    N, indim = h.shape
    src = h[src_idx.reshape(-1)]
    dst = jnp.repeat(h, K, axis=0)
    z2 = jnp.concatenate([src, dst, ef], axis=1)
    e = jnp.maximum(z2 @ params["w_pre"] + params["b_pre"], 0.0)
    m = e.reshape(N, K, indim)
    mean = m.mean(axis=1)
    mx = m.max(axis=1)
    mn = m.min(axis=1)
    std = jnp.sqrt(jnp.maximum((m * m).mean(axis=1) - mean * mean, 0.0) + eps)
    agg = jnp.concatenate([mean, mx, mn, std], axis=1)
    agg = jnp.concatenate([agg, agg * amp_scale, agg * att_scale], axis=1)
    hcat = jnp.concatenate([h, agg], axis=1)
    out = jnp.maximum(hcat @ params["w_post"] + params["b_post"], 0.0)
    bm = out.mean(axis=0, keepdims=True)
    bv = ((out - bm) ** 2).mean(axis=0, keepdims=True)
    out = (out - bm) / jnp.sqrt(bv + 1e-5) * params["bn_gamma"] + params["bn_beta"]
    return out


def _torch_linear_init(key, fan_in, fan_out):
    bound = 1.0 / np.sqrt(fan_in)
    kw, kb = jax.random.split(key)
    w = jax.random.uniform(kw, (fan_in, fan_out), jnp.float32, -bound, bound)
    b = jax.random.uniform(kb, (fan_out,), jnp.float32, -bound, bound)
    return w, b


def _make_graph(key, n, k_deg, feat_dim, edge_dim):
    k_h, k_e = jax.random.split(key)
    h = jax.random.normal(k_h, (n, feat_dim), jnp.float32)
    ef = jax.random.normal(k_e, (n * k_deg, edge_dim), jnp.float32)
    # Deterministic K-regular connectivity: node n receives from (n+1..n+K) mod N.
    src_idx = jnp.asarray(
        np.stack([(np.arange(n) + k + 1) % n for k in range(k_deg)], axis=1), jnp.int32)
    return h, ef, src_idx


if __name__ == "__main__":
    K = 4
    F, OUT, ED = 32, 32, 16                     # per-tower dims
    avg_d_log = float(np.log(4.0))
    amp = float(np.log(K + 1) / avg_d_log)      # amplification scaler (K-regular graph)
    att = float(avg_d_log / np.log(K + 1))      # attenuation scaler

    # ---------- Check 1: single tower, f32 matmuls, padded/masked tile path ----------
    N1 = 20
    key = jax.random.PRNGKey(0)
    k_g, k_pre, k_post = jax.random.split(key, 3)
    h1, ef1, src1 = _make_graph(k_g, N1, K, F, ED)
    w_pre, b_pre = _torch_linear_init(k_pre, 2 * F + ED, F)
    w_post, b_post = _torch_linear_init(k_post, F * 13, OUT)
    params1 = dict(w_pre=w_pre, b_pre=b_pre, w_post=w_post, b_post=b_post,
                   bn_gamma=jnp.ones((OUT,), jnp.float32),
                   bn_beta=jnp.zeros((OUT,), jnp.float32))

    fwd1 = jax.jit(functools.partial(pna_tower_forward, K=K, amp_scale=amp, att_scale=att,
                                     matmul_dtype=jnp.float32))
    out1 = jax.block_until_ready(fwd1(h1, ef1, src1, params1))
    ref1 = pna_tower_reference(h1, ef1, src1, params1, K=K, amp_scale=amp, att_scale=att)
    np.testing.assert_allclose(np.asarray(out1), np.asarray(ref1), rtol=2e-4, atol=2e-4)

    # ---------- Check 2: 4 towers lane-packed (128-lane features), bf16 matmuls,
    # ----------          multi-tile parallel grid with per-tile BN partial stats ----------
    T, N2 = 4, 80
    key2 = jax.random.PRNGKey(1)
    k_g2, *k_towers = jax.random.split(key2, 1 + T)
    h2, ef2, src2 = _make_graph(k_g2, N2, K, T * F, ED)

    tower_raw, tower_prep = [], []
    for t in range(T):
        kp, kq = jax.random.split(k_towers[t])
        wpre_t, bpre_t = _torch_linear_init(kp, 2 * F + ED, F)
        wpost_t, bpost_t = _torch_linear_init(kq, F * 13, OUT)
        p = dict(w_pre=wpre_t, b_pre=bpre_t, w_post=wpost_t, b_post=bpost_t,
                 bn_gamma=jnp.ones((OUT,), jnp.float32),
                 bn_beta=jnp.zeros((OUT,), jnp.float32))
        tower_raw.append(p)
        tower_prep.append(prepare_tower(p, F, amp, att))
    packed = pack_towers(tower_prep)

    fwd2 = jax.jit(functools.partial(pna_forward, K=K, node_tile=32,
                                     matmul_dtype=jnp.bfloat16))
    out2 = jax.block_until_ready(fwd2(h2, ef2, src2, packed))
    ref2 = jnp.concatenate(
        [pna_tower_reference(h2[:, t * F:(t + 1) * F], ef2, src2, tower_raw[t],
                             K=K, amp_scale=amp, att_scale=att) for t in range(T)], axis=1)
    np.testing.assert_allclose(np.asarray(out2), np.asarray(ref2), rtol=5e-2, atol=5e-2)

    print("KERNEL_OK")
</pallas_src>

<mosaic_0001>
module attributes {stable_mosaic.version = 11 : i64} {
  func.func @_pna_fused_kernel(%arg0: i32, %arg1: memref<24x32xf32, #tpu.memory_space<vmem>>, %arg2: memref<4x24x48xf32, #tpu.memory_space<vmem>>, %arg3: memref<48x32xf32, #tpu.memory_space<vmem>>, %arg4: memref<1x32xf32, #tpu.memory_space<vmem>>, %arg5: memref<32x64xf32, #tpu.memory_space<vmem>>, %arg6: memref<128x32xf32, #tpu.memory_space<vmem>>, %arg7: memref<1x32xf32, #tpu.memory_space<vmem>>, %arg8: memref<24x32xf32, #tpu.memory_space<vmem>>, %arg9: memref<1x2x32xf32, #tpu.memory_space<vmem>>) attributes {dimension_semantics = [#tpu.dimension_semantics<parallel>], iteration_bounds = array<i64: 1>, scalar_prefetch = 0 : i64, scratch_operands = 0 : i64, tpu.core_type = #tpu.core_type<tc>, window_params = [{transform_indices = @transform_0, window_bounds = array<i64: 24, 32>}, {transform_indices = @transform_1, window_bounds = array<i64: 4, 24, 48>}, {pipeline_mode = #tpu.pipeline_mode<synchronous>, transform_indices = @transform_2, window_bounds = array<i64: 48, 32>}, {pipeline_mode = #tpu.pipeline_mode<synchronous>, transform_indices = @transform_3, window_bounds = array<i64: 1, 32>}, {pipeline_mode = #tpu.pipeline_mode<synchronous>, transform_indices = @transform_4, window_bounds = array<i64: 32, 64>}, {pipeline_mode = #tpu.pipeline_mode<synchronous>, transform_indices = @transform_5, window_bounds = array<i64: 128, 32>}, {pipeline_mode = #tpu.pipeline_mode<synchronous>, transform_indices = @transform_6, window_bounds = array<i64: 1, 32>}, {transform_indices = @transform_7, window_bounds = array<i64: 24, 32>}, {transform_indices = @transform_8, window_bounds = array<i64: 1, 2, 32>}]} {
    %c0 = arith.constant 0 : index
    %c0_0 = arith.constant 0 : index
    %0 = vector.load %arg1[%c0, %c0_0] : memref<24x32xf32, #tpu.memory_space<vmem>>, vector<24x32xf32>
    %c0_1 = arith.constant 0 : index
    %c0_2 = arith.constant 0 : index
    %1 = vector.load %arg5[%c0_1, %c0_2] : memref<32x64xf32, #tpu.memory_space<vmem>>, vector<32x64xf32>
    %cst = arith.constant dense<0.000000e+00> : vector<24x64xf32>
    %2 = tpu.matmul %0, %1, %cst {dimension_numbers = #tpu.dot_dimension_numbers<[1], [0], [0], [1], [0, 0, 1, 1], [], []>} : vector<24x32xf32>, vector<32x64xf32>, vector<24x64xf32> -> vector<24x64xf32>
    %3 = vector.extract_strided_slice %2 {offsets = [0, 0], sizes = [24, 32], strides = [1, 1]} : vector<24x64xf32> to vector<24x32xf32>
    %c0_3 = arith.constant 0 : index
    %c0_4 = arith.constant 0 : index
    %4 = vector.load %arg4[%c0_3, %c0_4] : memref<1x32xf32, #tpu.memory_space<vmem>>, vector<1x32xf32>
    %5 = vector.broadcast %4 : vector<1x32xf32> to vector<24x32xf32>
    %6 = arith.addf %3, %5 : vector<24x32xf32>
    %7 = vector.extract_strided_slice %2 {offsets = [0, 32], sizes = [24, 32], strides = [1, 1]} : vector<24x64xf32> to vector<24x32xf32>
    %c0_5 = arith.constant 0 : index
    %c0_6 = arith.constant 0 : index
    %c0_7 = arith.constant 0 : index
    %8 = vector.load %arg2[%c0_5, %c0_6, %c0_7] : memref<4x24x48xf32, #tpu.memory_space<vmem>>, vector<4x24x48xf32>
    %9 = vector.shape_cast %8 : vector<4x24x48xf32> to vector<96x48xf32>
    %c0_8 = arith.constant 0 : index
    %c0_9 = arith.constant 0 : index
    %10 = vector.load %arg3[%c0_8, %c0_9] : memref<48x32xf32, #tpu.memory_space<vmem>>, vector<48x32xf32>
    %cst_10 = arith.constant dense<0.000000e+00> : vector<96x32xf32>
    %11 = tpu.matmul %9, %10, %cst_10 {dimension_numbers = #tpu.dot_dimension_numbers<[1], [0], [0], [1], [0, 0, 1, 1], [], []>} : vector<96x48xf32>, vector<48x32xf32>, vector<96x32xf32> -> vector<96x32xf32>
    %12 = vector.extract_strided_slice %11 {offsets = [0, 0], sizes = [24, 32], strides = [1, 1]} : vector<96x32xf32> to vector<24x32xf32>
    %13 = arith.addf %12, %6 : vector<24x32xf32>
    %cst_11 = arith.constant 0.000000e+00 : f32
    %14 = vector.broadcast %cst_11 : f32 to vector<24x32xf32>
    %15 = arith.maximumf %13, %14 : vector<24x32xf32>
    %16 = arith.mulf %15, %15 : vector<24x32xf32>
    %17 = vector.extract_strided_slice %11 {offsets = [24, 0], sizes = [24, 32], strides = [1, 1]} : vector<96x32xf32> to vector<24x32xf32>
    %18 = arith.addf %17, %6 : vector<24x32xf32>
    %cst_12 = arith.constant 0.000000e+00 : f32
    %19 = vector.broadcast %cst_12 : f32 to vector<24x32xf32>
    %20 = arith.maximumf %18, %19 : vector<24x32xf32>
    %21 = arith.addf %15, %20 : vector<24x32xf32>
    %22 = arith.mulf %20, %20 : vector<24x32xf32>
    %23 = arith.addf %16, %22 : vector<24x32xf32>
    %24 = arith.maximumf %15, %20 : vector<24x32xf32>
    %25 = arith.minimumf %15, %20 : vector<24x32xf32>
    %26 = vector.extract_strided_slice %11 {offsets = [48, 0], sizes = [24, 32], strides = [1, 1]} : vector<96x32xf32> to vector<24x32xf32>
    %27 = arith.addf %26, %6 : vector<24x32xf32>
    %cst_13 = arith.constant 0.000000e+00 : f32
    %28 = vector.broadcast %cst_13 : f32 to vector<24x32xf32>
    %29 = arith.maximumf %27, %28 : vector<24x32xf32>
    %30 = arith.addf %21, %29 : vector<24x32xf32>
    %31 = arith.mulf %29, %29 : vector<24x32xf32>
    %32 = arith.addf %23, %31 : vector<24x32xf32>
    %33 = arith.maximumf %24, %29 : vector<24x32xf32>
    %34 = arith.minimumf %25, %29 : vector<24x32xf32>
    %35 = vector.extract_strided_slice %11 {offsets = [72, 0], sizes = [24, 32], strides = [1, 1]} : vector<96x32xf32> to vector<24x32xf32>
    %36 = arith.addf %35, %6 : vector<24x32xf32>
    %cst_14 = arith.constant 0.000000e+00 : f32
    %37 = vector.broadcast %cst_14 : f32 to vector<24x32xf32>
    %38 = arith.maximumf %36, %37 : vector<24x32xf32>
    %39 = arith.addf %30, %38 : vector<24x32xf32>
    %40 = arith.mulf %38, %38 : vector<24x32xf32>
    %41 = arith.addf %32, %40 : vector<24x32xf32>
    %42 = arith.maximumf %33, %38 : vector<24x32xf32>
    %43 = arith.minimumf %34, %38 : vector<24x32xf32>
    %cst_15 = arith.constant 2.500000e-01 : f32
    %44 = vector.broadcast %cst_15 : f32 to vector<24x32xf32>
    %45 = arith.mulf %39, %44 : vector<24x32xf32>
    %cst_16 = arith.constant 2.500000e-01 : f32
    %46 = vector.broadcast %cst_16 : f32 to vector<24x32xf32>
    %47 = arith.mulf %41, %46 : vector<24x32xf32>
    %48 = arith.mulf %45, %45 : vector<24x32xf32>
    %49 = arith.subf %47, %48 : vector<24x32xf32>
    %cst_17 = arith.constant 0.000000e+00 : f32
    %50 = vector.broadcast %cst_17 : f32 to vector<24x32xf32>
    %51 = arith.maximumf %49, %50 : vector<24x32xf32>
    %cst_18 = arith.constant 9.99999974E-6 : f32
    %52 = vector.broadcast %cst_18 : f32 to vector<24x32xf32>
    %53 = arith.addf %51, %52 : vector<24x32xf32>
    %54 = math.sqrt %53 : vector<24x32xf32>
    %55 = tpu.concatenate %45, %42, %43, %54 in 1 : vector<24x32xf32>, vector<24x32xf32>, vector<24x32xf32>, vector<24x32xf32> -> vector<24x128xf32>
    %c0_19 = arith.constant 0 : index
    %c0_20 = arith.constant 0 : index
    %56 = vector.load %arg6[%c0_19, %c0_20] : memref<128x32xf32, #tpu.memory_space<vmem>>, vector<128x32xf32>
    %cst_21 = arith.constant dense<0.000000e+00> : vector<24x32xf32>
    %57 = tpu.matmul %55, %56, %cst_21 {dimension_numbers = #tpu.dot_dimension_numbers<[1], [0], [0], [1], [0, 0, 1, 1], [], []>} : vector<24x128xf32>, vector<128x32xf32>, vector<24x32xf32> -> vector<24x32xf32>
    %58 = arith.addf %7, %57 : vector<24x32xf32>
    %c0_22 = arith.constant 0 : index
    %c0_23 = arith.constant 0 : index
    %59 = vector.load %arg7[%c0_22, %c0_23] : memref<1x32xf32, #tpu.memory_space<vmem>>, vector<1x32xf32>
    %60 = vector.broadcast %59 : vector<1x32xf32> to vector<24x32xf32>
    %61 = arith.addf %58, %60 : vector<24x32xf32>
    %cst_24 = arith.constant 0.000000e+00 : f32
    %62 = vector.broadcast %cst_24 : f32 to vector<24x32xf32>
    %63 = arith.maximumf %61, %62 : vector<24x32xf32>
    %c0_25 = arith.constant 0 : index
    %c0_26 = arith.constant 0 : index
    %64 = vector.load %arg8[%c0_25, %c0_26] : memref<24x32xf32, #tpu.memory_space<vmem>>, vector<24x32xf32>
    tpu.vector_store %arg8[%c0_25, %c0_26], %63 {strides = array<i32>} : memref<24x32xf32, #tpu.memory_space<vmem>>, vector<24x32xf32>,
    %c24_i32 = arith.constant 24 : i32
    %65 = arith.muli %arg0, %c24_i32 : i32
    %66 = tpu.iota {dimensions = array<i32: 0>} : vector<24x32xi32>
    %67 = vector.broadcast %65 : i32 to vector<24x32xi32>
    %68 = arith.addi %67, %66 : vector<24x32xi32>
    %c20_i32 = arith.constant 20 : i32
    %69 = vector.broadcast %c20_i32 : i32 to vector<24x32xi32>
    %70 = arith.cmpi slt, %68, %69 : vector<24x32xi32>
    %cst_27 = arith.constant 0.000000e+00 : f32
    %71 = vector.broadcast %cst_27 : f32 to vector<24x32xf32>
    %72 = arith.select %70, %63, %71 : vector<24x32xi1>, vector<24x32xf32>
    %cst_28 = arith.constant dense<0.000000e+00> : vector<32xf32>
    %73 = vector.multi_reduction <add>, %72, %cst_28 [0] : vector<24x32xf32> to vector<32xf32>
    %74 = vector.shape_cast %73 : vector<32xf32> to vector<1x32xf32>
    %75 = arith.mulf %72, %72 : vector<24x32xf32>
    %cst_29 = arith.constant dense<0.000000e+00> : vector<32xf32>
    %76 = vector.multi_reduction <add>, %75, %cst_29 [0] : vector<24x32xf32> to vector<32xf32>
    %77 = vector.shape_cast %76 : vector<32xf32> to vector<1x32xf32>
    %78 = tpu.concatenate %74, %77 in 0 : vector<1x32xf32>, vector<1x32xf32> -> vector<2x32xf32>
    %79 = vector.shape_cast %78 : vector<2x32xf32> to vector<1x2x32xf32>
    %c0_30 = arith.constant 0 : index
    %c0_31 = arith.constant 0 : index
    %c0_32 = arith.constant 0 : index
    %80 = vector.load %arg9[%c0_30, %c0_31, %c0_32] : memref<1x2x32xf32, #tpu.memory_space<vmem>>, vector<1x2x32xf32>
    tpu.vector_store %arg9[%c0_30, %c0_31, %c0_32], %79 {strides = array<i32>} : memref<1x2x32xf32, #tpu.memory_space<vmem>>, vector<1x2x32xf32>,
    return
  }
  func.func @transform_0(%arg0: i32) -> (i32, i32) {
    %c0_i32 = arith.constant 0 : i32
    %c0_i32_0 = arith.constant 0 : i32
    return %arg0, %c0_i32 : i32, i32
  }
  func.func @transform_1(%arg0: i32) -> (i32, i32, i32) {
    %c0_i32 = arith.constant 0 : i32
    %c0_i32_0 = arith.constant 0 : i32
    %c0_i32_1 = arith.constant 0 : i32
    return %c0_i32, %arg0, %c0_i32_0 : i32, i32, i32
  }
  func.func @transform_2(%arg0: i32) -> (i32, i32) {
    %c0_i32 = arith.constant 0 : i32
    %c0_i32_0 = arith.constant 0 : i32
    %c0_i32_1 = arith.constant 0 : i32
    return %c0_i32, %c0_i32_0 : i32, i32
  }
  func.func @transform_3(%arg0: i32) -> (i32, i32) {
    %c0_i32 = arith.constant 0 : i32
    %c0_i32_0 = arith.constant 0 : i32
    %c0_i32_1 = arith.constant 0 : i32
    return %c0_i32, %c0_i32_0 : i32, i32
  }
  func.func @transform_4(%arg0: i32) -> (i32, i32) {
    %c0_i32 = arith.constant 0 : i32
    %c0_i32_0 = arith.constant 0 : i32
    %c0_i32_1 = arith.constant 0 : i32
    return %c0_i32, %c0_i32_0 : i32, i32
  }
  func.func @transform_5(%arg0: i32) -> (i32, i32) {
    %c0_i32 = arith.constant 0 : i32
    %c0_i32_0 = arith.constant 0 : i32
    %c0_i32_1 = arith.constant 0 : i32
    return %c0_i32, %c0_i32_0 : i32, i32
  }
  func.func @transform_6(%arg0: i32) -> (i32, i32) {
    %c0_i32 = arith.constant 0 : i32
    %c0_i32_0 = arith.constant 0 : i32
    %c0_i32_1 = arith.constant 0 : i32
    return %c0_i32, %c0_i32_0 : i32, i32
  }
  func.func @transform_7(%arg0: i32) -> (i32, i32) {
    %c0_i32 = arith.constant 0 : i32
    %c0_i32_0 = arith.constant 0 : i32
    return %arg0, %c0_i32 : i32, i32
  }
  func.func @transform_8(%arg0: i32) -> (i32, i32, i32) {
    %c0_i32 = arith.constant 0 : i32
    %c0_i32_0 = arith.constant 0 : i32
    %c0_i32_1 = arith.constant 0 : i32
    return %arg0, %c0_i32, %c0_i32_0 : i32, i32, i32
  }
}

module attributes {stable_mosaic.version = 11 : i64} {
  func.func @_bn_apply_kernel(%arg0: i32, %arg1: memref<24x32xf32, #tpu.memory_space<vmem>>, %arg2: memref<1x32xf32, #tpu.memory_space<vmem>>, %arg3: memref<1x32xf32, #tpu.memory_space<vmem>>, %arg4: memref<24x32xf32, #tpu.memory_space<vmem>>) attributes {dimension_semantics = [#tpu.dimension_semantics<parallel>], iteration_bounds = array<i64: 1>, scalar_prefetch = 0 : i64, scratch_operands = 0 : i64, tpu.core_type = #tpu.core_type<tc>, window_params = [{transform_indices = @transform_0, window_bounds = array<i64: 24, 32>}, {pipeline_mode = #tpu.pipeline_mode<synchronous>, transform_indices = @transform_1, window_bounds = array<i64: 1, 32>}, {pipeline_mode = #tpu.pipeline_mode<synchronous>, transform_indices = @transform_2, window_bounds = array<i64: 1, 32>}, {transform_indices = @transform_3, window_bounds = array<i64: 24, 32>}]} {
    %c0 = arith.constant 0 : index
    %c0_0 = arith.constant 0 : index
    %0 = vector.load %arg1[%c0, %c0_0] : memref<24x32xf32, #tpu.memory_space<vmem>>, vector<24x32xf32>
    %c0_1 = arith.constant 0 : index
    %c0_2 = arith.constant 0 : index
    %1 = vector.load %arg2[%c0_1, %c0_2] : memref<1x32xf32, #tpu.memory_space<vmem>>, vector<1x32xf32>
    %2 = vector.broadcast %1 : vector<1x32xf32> to vector<24x32xf32>
    %3 = arith.mulf %0, %2 : vector<24x32xf32>
    %c0_3 = arith.constant 0 : index
    %c0_4 = arith.constant 0 : index
    %4 = vector.load %arg3[%c0_3, %c0_4] : memref<1x32xf32, #tpu.memory_space<vmem>>, vector<1x32xf32>
    %5 = vector.broadcast %4 : vector<1x32xf32> to vector<24x32xf32>
    %6 = arith.addf %3, %5 : vector<24x32xf32>
    %c0_5 = arith.constant 0 : index
    %c0_6 = arith.constant 0 : index
    %7 = vector.load %arg4[%c0_5, %c0_6] : memref<24x32xf32, #tpu.memory_space<vmem>>, vector<24x32xf32>
    tpu.vector_store %arg4[%c0_5, %c0_6], %6 {strides = array<i32>} : memref<24x32xf32, #tpu.memory_space<vmem>>, vector<24x32xf32>,
    return
  }
  func.func @transform_0(%arg0: i32) -> (i32, i32) {
    %c0_i32 = arith.constant 0 : i32
    %c0_i32_0 = arith.constant 0 : i32
    return %arg0, %c0_i32 : i32, i32
  }
  func.func @transform_1(%arg0: i32) -> (i32, i32) {
    %c0_i32 = arith.constant 0 : i32
    %c0_i32_0 = arith.constant 0 : i32
    %c0_i32_1 = arith.constant 0 : i32
    return %c0_i32, %c0_i32_0 : i32, i32
  }
  func.func @transform_2(%arg0: i32) -> (i32, i32) {
    %c0_i32 = arith.constant 0 : i32
    %c0_i32_0 = arith.constant 0 : i32
    %c0_i32_1 = arith.constant 0 : i32
    return %c0_i32, %c0_i32_0 : i32, i32
  }
  func.func @transform_3(%arg0: i32) -> (i32, i32) {
    %c0_i32 = arith.constant 0 : i32
    %c0_i32_0 = arith.constant 0 : i32
    return %arg0, %c0_i32 : i32, i32
  }
}

</mosaic_0001>

<bundles_post_ra>
// kernel: pna_tower_forward.3
= control target key start
LH: loop header
LB: loop body
LE: loop exit
PB: predicated region body
PF: predicated region fallthrough
CT: control target
= control target key end

     0   :  { %vm37_vm0 = vcmask 261120   ;;  %s91_s0 = inlined_call_operand.vmem [shape: f32[24,32], index: 0, kind: input, shape index: {}, may-alias: {0,3}]   ;;  %s92_s1 = inlined_call_operand.vmem [shape: f32[1,32], index: 1, kind: input, shape index: {}]   ;;  %s93_s2 = inlined_call_operand.vmem [shape: f32[1,32], index: 2, kind: input, shape index: {}]   ;;  %s94_s3 = inlined_call_operand.vmem [shape: f32[24,32], index: 3, kind: output, shape index: {}, may-alias: {0,3}]  }
   0x1   :  { %v14_v0 = vld [vmem:[%s91_s0] sm:$0xff]  ;;  %v15_v4 = vld [vmem:[%s91_s0 + $0x8] sm:$0xff]  ;;  %v16_v5 = vld [vmem:[%s91_s0 + $0x10] sm:$0xff] }
   0x2   :  { %v45_v1 = vld [vmem:[%s92_s1] ss:$0 sm:$0xff] }
   0x3   :  { %v46_v2 = vld [vmem:[%s93_s2] ss:$0 sm:$0xff]  ;;  %v24_v3 = vmul.f32 %v45_v1, %v14_v0  ;;  %v25_v6 = vmul.f32 %v45_v1, %v15_v4  ;;  %v26_v7 = vmul.f32 %v45_v1, %v16_v5 }
   0x5   :  { %v34_v8 = vadd.f32 %v46_v2, %v24_v3  ;;  %v35_v9 = vadd.f32 %v46_v2, %v25_v6  ;;  %v36_v10 = vadd.f32 %v46_v2, %v26_v7 }
   0x7   :  { %38 = vst.msk [vmem:[%s94_s3] sm:$0xff] %vm37_vm0, %v34_v8  ;;  %39 = vst.msk [vmem:[%s94_s3 + $0x8] sm:$0xff] %vm37_vm0, %v35_v9 }
   0x8   :  { %40 = vst.msk [vmem:[%s94_s3 + $0x10] sm:$0xff] %vm37_vm0, %v36_v10 }

// kernel: pna_tower_forward.2
= control target key start
LH: loop header
LB: loop body
LE: loop exit
PB: predicated region body
PF: predicated region fallthrough
CT: control target
= control target key end

     0   :  { %v841_v0 = vmov 0.0   ;;  %vm842_vm0 = vmmov 0   ;;  %vm35_vm1 = vcmask 261120   ;;  %vm153_vm2 = vcmask 392192   ;;  %s843_s30 = smov 32   ;;  %s845_s13 = smov 96   ;;  %s1211_s4 = inlined_call_operand.vmem [shape: f32[32,64], index: 4, kind: input, shape index: {}]   ;;  %s1212_s0 = inlined_call_operand.vmem [shape: f32[24,32], index: 0, kind: input, shape index: {}]   ;;  %s1213_s2 = inlined_call_operand.vmem [shape: f32[48,32], index: 2, kind: input, shape index: {}]   ;;  %s1214_s1 = inlined_call_operand.vmem [shape: f32[4,24,48], index: 1, kind: input, shape index: {}]   ;;  %s1215_s5 = inlined_call_operand.vmem [shape: f32[128,32], index: 5, kind: input, shape index: {}]   ;;  %s1216_s3 = inlined_call_operand.vmem [shape: f32[1,32], index: 3, kind: input, shape index: {}]   ;;  %s1217_s6 = inlined_call_operand.vmem [shape: f32[1,32], index: 6, kind: input, shape index: {}]   ;;  %s1218_s7 = inlined_call_operand.vmem [shape: f32[24,32], index: 7, kind: output, shape index: {0}]   ;;  %s1219_s8 = inlined_call_operand.vmem [shape: f32[1,2,32], index: 8, kind: output, shape index: {1}]  }
   0x1   :  { %732 = vmatprep.subr.mxu1 %v841_v0  ;;  %v34_v1 = vld [vmem:[%s1211_s4 + $0x18] sm:$0xff]  ;;  %v33_v2 = vld [vmem:[%s1211_s4 + $0x10] sm:$0xff]  ;;  %740 = vmatprep.mubr.msk.f32.mxu1 %vm842_vm0, %v841_v0  ;;  %v32_v3 = vld [vmem:[%s1211_s4 + $0x8] sm:$0xff]  ;;  %vm465_vm9 = vcmask 523264   ;;  %vm469_vm10 = vcmask 785408   ;;  %vm629_vm11 = vcmask 523520  }
   0x2   :  { %733 = vmatpush3.msra.mxu1 %v34_v1  ;;  %779 = vmatprep.subr.mxu0 %v841_v0  ;;  %v31_v4 = vld [vmem:[%s1211_s4] sm:$0xff]  ;;  %v152_v6 = vld [vmem:[%s1213_s2 + $0x28] sm:$0xff]  ;;  %v150_v9 = vld [vmem:[%s1213_s2 + $0x18] sm:$0xff]  ;;  %vm655_vm13 = vcmask 1040384   ;;  %vm661_vm14 = vcmask 254976  }
   0x3   :  { %734 = vmatprep.subr.mxu1 %v841_v0  ;;  %811 = vmatprep.mubr.msk.f32.mxu0 %vm842_vm0, %v841_v0  ;;  %v28_v5 = vld [vmem:[%s1212_s0] sm:$0xff]  ;;  %v29_v8 = vld [vmem:[%s1212_s0 + $0x8] sm:$0xff]  ;;  %v149_v10 = vld [vmem:[%s1213_s2 + $0x10] sm:$0xff] }
   0x4   :  { %735 = vmatpush3.msra.mxu1 %v33_v2  ;;  %v151_v7 = vld [vmem:[%s1213_s2 + $0x20] sm:$0xff]  ;;  %v30_v11 = vld [vmem:[%s1212_s0 + $0x10] sm:$0xff]  ;;  %v148_v12 = vld [vmem:[%s1213_s2 + $0x8] sm:$0xff] }
   0x5   :  { %736 = vmatprep.subr.mxu1 %v841_v0  ;;  %v135_v13 = vld [vmem:[%s1214_s1] sm:$0xff]  ;;  %v136_v15 = vld [vmem:[%s1214_s1 + $0x8] sm:$0xff]  ;;  %v137_v16 = vld [vmem:[%s1214_s1 + $0x10] sm:$0xff] }
   0x6   :  { %737 = vmatpush3.msra.mxu1 %v32_v3  ;;  %v147_v14 = vld [vmem:[%s1213_s2] sm:$0xff]  ;;  %v138_v17 = vld [vmem:[%s1214_s1 + $0x18] sm:$0xff]  ;;  %v140_v19 = vld [vmem:[%s1214_s1 + $0x28] sm:$0xff] }
   0x7   :  { %738 = vmatprep.subr.mxu1 %v841_v0  ;;  %v139_v18 = vld [vmem:[%s1214_s1 + $0x20] sm:$0xff]  ;;  %v141_v20 = vld [vmem:[%s1214_s1 + $0x30] sm:$0xff]  ;;  %v142_v21 = vld [vmem:[%s1214_s1 + $0x38] sm:$0xff] }
   0x8   :  { %739 = vmatpush3.msra.mxu1 %v31_v4  ;;  %v143_v22 = vld [vmem:[%s1214_s1 + $0x40] sm:$0xff]  ;;  %v144_v23 = vld [vmem:[%s1214_s1 + $0x48] sm:$0xff]  ;;  %v145_v24 = vld [vmem:[%s1214_s1 + $0x50] sm:$0xff] }
   0x9   :  { %741 = vmatmul.mubr.msk.f32.vlgmr.msra.gmra.mxu1 %vm35_vm1, %v28_v5  ;;  %749 = vmatprep.subr.mxu1 %v152_v6  ;;  %v146_v25 = vld [vmem:[%s1214_s1 + $0x58] sm:$0xff]  ;;  %v487_v27 = vld [vmem:[%s1215_s5 + $0x70] sm:$0xff]  ;;  %v486_v28 = vld [vmem:[%s1215_s5 + $0x68] sm:$0xff]  ;;  %s844_s1 = smov 64  }
   0xa   :  { %750 = vmatpush3.msra.mxu1 %v152_v6  ;;  %743 = vmatprep.mubr.msk.f32.mxu1 %vm842_vm0, %v841_v0  ;;  %v488_v26 = vld [vmem:[%s1215_s5 + $0x78] sm:$0xff]  ;;  %v485_v29 = vld [vmem:[%s1215_s5 + $0x60] sm:$0xff] }
   0xb   :  { %751 = vmatprep.subr.mxu1 %v151_v7  ;;  %780 = vmatpush3.msra.mxu0 %v488_v26  ;;  %v484_v30 = vld [vmem:[%s1215_s5 + $0x58] sm:$0xff]  ;;  %v674_v37 = vld [vmem:[%s1216_s3] ss:$0 sm:$0xff] }
   0xc   :  { %752 = vmatpush3.msra.mxu1 %v151_v7  ;;  %781 = vmatprep.subr.mxu0 %v841_v0 }
   0xd   :  { %744 = vmatmul.mubr.msk.f32.gmra.mxu1 %vm35_vm1, %v29_v8  ;;  %753 = vmatprep.subr.mxu1 %v150_v9 }
   0xe   :  { %754 = vmatpush3.msra.mxu1 %v150_v9  ;;  %746 = vmatprep.mubr.msk.f32.mxu1 %vm842_vm0, %v841_v0 }
   0xf   :  { %755 = vmatprep.subr.mxu1 %v149_v10  ;;  %782 = vmatpush3.msra.mxu0 %v487_v27 }
  0x10   :  { %756 = vmatpush3.msra.mxu1 %v149_v10  ;;  %783 = vmatprep.subr.mxu0 %v841_v0 }
  0x11   :  { %747 = vmatmul.mubr.msk.f32.gmra.mxu1 %vm35_vm1, %v30_v11  ;;  %757 = vmatprep.subr.mxu1 %v148_v12 }
  0x12   :  { %758 = vmatpush3.msra.mxu1 %v148_v12  ;;  %761 = vmatprep.mubr.msk.f32.mxu1 %vm153_vm2, %v135_v13 }
  0x13   :  { %759 = vmatprep.subr.mxu1 %v147_v14  ;;  %784 = vmatpush3.msra.mxu0 %v486_v28 }
  0x14   :  { %760 = vmatpush3.msra.mxu1 %v147_v14  ;;  %785 = vmatprep.subr.mxu0 %v841_v0 }
  0x15   :  { %762 = vmatmul.mubr.msk.f32.vlgmr.msra.gmra.mxu1 %vm153_vm2, %v136_v15  ;;  %786 = vmatpush3.msra.mxu0 %v485_v29 }
  0x16   :  { %764 = vmatprep.mubr.msk.f32.mxu1 %vm153_vm2, %v137_v16  ;;  %787 = vmatprep.subr.mxu0 %v841_v0  ;;  %v483_v16 = vld [vmem:[%s1215_s5 + $0x50] sm:$0xff] }
  0x17   :  { %788 = vmatpush3.msra.mxu0 %v484_v30 }
  0x18   :  { %789 = vmatprep.subr.mxu0 %v841_v0 }
  0x19   :  { %765 = vmatmul.mubr.msk.f32.gmra.mxu1 %vm153_vm2, %v138_v17  ;;  %790 = vmatpush3.msra.mxu0 %v483_v16 }
  0x1a   :  { %767 = vmatprep.mubr.msk.f32.mxu1 %vm153_vm2, %v139_v18  ;;  %791 = vmatprep.subr.mxu0 %v841_v0 }
  0x1d   :  { %768 = vmatmul.mubr.msk.f32.gmra.mxu1 %vm153_vm2, %v140_v19 }
  0x1e   :  { %770 = vmatprep.mubr.msk.f32.mxu1 %vm153_vm2, %v141_v20 }
  0x21   :  { %771 = vmatmul.mubr.msk.f32.gmra.mxu1 %vm153_vm2, %v142_v21  ;;  %v482_v21 = vld [vmem:[%s1215_s5 + $0x48] sm:$0xff] }
  0x22   :  { %773 = vmatprep.mubr.msk.f32.mxu1 %vm153_vm2, %v143_v22  ;;  %792 = vmatpush3.msra.mxu0 %v482_v21 }
  0x23   :  { %793 = vmatprep.subr.mxu0 %v841_v0 }
  0x25   :  { %774 = vmatmul.mubr.msk.f32.gmra.mxu1 %vm153_vm2, %v144_v23 }
  0x26   :  { %776 = vmatprep.mubr.msk.f32.mxu1 %vm153_vm2, %v145_v24 }
  0x29   :  { %777 = vmatmul.mubr.msk.f32.gmra.mxu1 %vm153_vm2, %v146_v25 }
  0xc9   :  { %v1014_v31 = vpop.f32.mrf.mxu1 }
  0xca   :  { %v132_v40 = vadd.f32 %v674_v37, %v1014_v31 }
  0xcb   :  { %v742_v32 = vpop.f32.mrf.mxu1 }
  0xcd   :  { %v1016_v33 = vpop.f32.mrf.mxu1 }
  0xce   :  { %v1025_v42 = vadd.f32 %v674_v37, %v1016_v33 }
  0xcf   :  { %v745_v34 = vpop.f32.mrf.mxu1 }
  0xd1   :  { %v1018_v35 = vpop.f32.mrf.mxu1 }
  0xd2   :  { %v134_v47 = vadd.f32 %v674_v37, %v1018_v35 }
  0xd3   :  { %v748_v36 = vpop.f32.mrf.mxu1 }
  0xd5   :  { %v763_v38 = vpop.f32.mrf.mxu1 }
  0xd6   :  { %v316_v45 = vadd.f32 %v763_v38, %v1025_v42 }
  0xd7   :  { %v256_v39 = vpop.f32.mrf.mxu1 }
  0xd8   :  { %v315_v46 = vadd.f32 %v256_v39, %v132_v40  ;;  %v1031_v53 = vmax.f32 %v316_v45, 0.0  ;;  %v481_v39 = vld [vmem:[%s1215_s5 + $0x40] sm:$0xff]  ;;  %v480_v45 = vld [vmem:[%s1215_s5 + $0x38] sm:$0xff] }
  0xd9   :  { %v766_v41 = vpop.f32.mrf.mxu1  ;;  %794 = vmatpush3.msra.mxu0 %v481_v39 }
  0xda   :  { %v324_v43 = vadd.f32 %v766_v41, %v132_v40  ;;  %v1033_v54 = vmax.f32 %v315_v46, 0.0  ;;  %v322_v63 = vmul.f32 %v1031_v53, %v1031_v53  ;;  %795 = vmatprep.subr.mxu0 %v841_v0 }
  0xdb   :  { %v266_v44 = vpop.f32.mrf.mxu1  ;;  %796 = vmatpush3.msra.mxu0 %v480_v45 }
  0xdc   :  { %v1029_v49 = vmax.f32 %v324_v43, 0.0  ;;  %v317_v50 = vadd.f32 %v266_v44, %v134_v47  ;;  %v321_v1 = vmul.f32 %v1033_v54, %v1033_v54  ;;  %797 = vmatprep.subr.mxu0 %v841_v0 }
  0xdd   :  { %v769_v48 = vpop.f32.mrf.mxu1 }
  0xde   :  { %v326_v51 = vadd.f32 %v769_v48, %v134_v47  ;;  %v333_v58 = vmul.f32 %v1029_v49, %v1029_v49  ;;  %v1042_v60 = vmax.f32 %v317_v50, 0.0  ;;  %v330_v2 = vadd.f32 %v1029_v49, %v1033_v54 }
  0xdf   :  { %v276_v52 = vpop.f32.mrf.mxu1  ;;  %v342_v3 = vmin.f32 %v1033_v54, %v1029_v49  ;;  %v339_v10 = vmax.f32 %v1033_v54, %v1029_v49  ;;  %v476_v49 = vld [vmem:[%s1215_s5 + $0x18] sm:$0xff] }
  0xe0   :  { %v325_v55 = vadd.f32 %v276_v52, %v1025_v42  ;;  %v1036_v56 = vmax.f32 %v326_v51, 0.0  ;;  %v336_v7 = vadd.f32 %v333_v58, %v321_v1  ;;  %v323_v11 = vmul.f32 %v1042_v60, %v1042_v60 }
  0xe1   :  { %v772_v57 = vpop.f32.mrf.mxu1 }
  0xe2   :  { %v1040_v59 = vmax.f32 %v325_v55, 0.0  ;;  %v346_v61 = vadd.f32 %v772_v57, %v1025_v42  ;;  %v335_v4 = vmul.f32 %v1036_v56, %v1036_v56  ;;  %v332_v17 = vadd.f32 %v1036_v56, %v1042_v60 }
  0xe3   :  { %v286_v62 = vpop.f32.mrf.mxu1  ;;  %v341_v21 = vmax.f32 %v1042_v60, %v1036_v56 }
  0xe4   :  { %v345_v5 = vadd.f32 %v286_v62, %v132_v40  ;;  %v334_v8 = vmul.f32 %v1040_v59, %v1040_v59  ;;  %v331_v12 = vadd.f32 %v1040_v59, %v1031_v53  ;;  %v349_v13 = vmax.f32 %v346_v61, 0.0  ;;  %v479_v61 = vld [vmem:[%s1215_s5 + $0x30] sm:$0xff] }
  0xe5   :  { %v775_v6 = vpop.f32.mrf.mxu1  ;;  %v343_v18 = vmin.f32 %v1031_v53, %v1040_v59  ;;  %v338_v22 = vadd.f32 %v335_v4, %v323_v11  ;;  %v340_v26 = vmax.f32 %v1031_v53, %v1040_v59  ;;  %798 = vmatpush3.msra.mxu0 %v479_v61  ;;  %v478_v4 = vld [vmem:[%s1215_s5 + $0x28] sm:$0xff] }
  0xe6   :  { %v366_v9 = vadd.f32 %v775_v6, %v132_v40  ;;  %v348_v14 = vmax.f32 %v345_v5, 0.0  ;;  %v337_v27 = vadd.f32 %v334_v8, %v322_v63  ;;  %v352_v32 = vadd.f32 %v349_v13, %v331_v12  ;;  %799 = vmatprep.subr.mxu0 %v841_v0 }
  0xe7   :  { %v296_v15 = vpop.f32.mrf.mxu1  ;;  %v355_v34 = vmul.f32 %v349_v13, %v349_v13  ;;  %v361_v50 = vmax.f32 %v340_v26, %v349_v13  ;;  %v364_v59 = vmin.f32 %v343_v18, %v349_v13  ;;  %800 = vmatpush3.msra.mxu0 %v478_v4 }
  0xe8   :  { %v1070_v19 = vmax.f32 %v366_v9, 0.0  ;;  %v347_v20 = vadd.f32 %v296_v15, %v134_v47  ;;  %v351_v23 = vadd.f32 %v348_v14, %v330_v2  ;;  %v354_v24 = vmul.f32 %v348_v14, %v348_v14  ;;  %v477_v9 = vld [vmem:[%s1215_s5 + $0x20] sm:$0xff]  ;;  %801 = vmatprep.subr.mxu0 %v841_v0 }
  0xe9   :  { %v778_v25 = vpop.f32.mrf.mxu1  ;;  %v360_v48 = vmax.f32 %v339_v10, %v348_v14  ;;  %v363_v8 = vmin.f32 %v342_v3, %v348_v14  ;;  %802 = vmatpush3.msra.mxu0 %v477_v9 }
  0xea   :  { %v375_v28 = vmul.f32 %v1070_v19, %v1070_v19  ;;  %v1080_v29 = vmax.f32 %v347_v20, 0.0  ;;  %v368_v30 = vadd.f32 %v778_v25, %v134_v47  ;;  %v357_v36 = vadd.f32 %v354_v24, %v336_v7  ;;  %803 = vmatprep.subr.mxu0 %v841_v0 }
  0xeb   :  { %v372_v37 = vadd.f32 %v1070_v19, %v351_v23  ;;  %v306_v38 = vpop.f32.mrf.mxu1  ;;  %v381_v6 = vmax.f32 %v360_v48, %v1070_v19  ;;  %v384_v20 = vmin.f32 %v363_v8, %v1070_v19  ;;  %804 = vmatpush3.msra.mxu0 %v476_v49  ;;  %v474_v19 = vld [vmem:[%s1215_s5 + $0x8] sm:$0xff] }
  0xec   :  { %v353_v40 = vadd.f32 %v1080_v29, %v332_v17  ;;  %v356_v41 = vmul.f32 %v1080_v29, %v1080_v29  ;;  %v1090_v43 = vmax.f32 %v368_v30, 0.0  ;;  %v367_v44 = vadd.f32 %v306_v38, %v1025_v42  ;;  %805 = vmatprep.subr.mxu0 %v841_v0 }
  0xed   :  { %v378_v46 = vadd.f32 %v375_v28, %v357_v36  ;;  %v1096_v47 = vmul.f32 0.25, %v372_v37  ;;  %v358_v42 = vadd.f32 %v355_v34, %v337_v27  ;;  %v362_v26 = vmax.f32 %v341_v21, %v1080_v29  ;;  %v473_v34 = vld [vmem:[%s1215_s5] sm:$0xff] }
  0xee   :  { %v359_v51 = vadd.f32 %v356_v41, %v338_v22  ;;  %v374_v52 = vadd.f32 %v1090_v43, %v353_v40  ;;  %v377_v53 = vmul.f32 %v1090_v43, %v1090_v43  ;;  %v370_v55 = vmax.f32 %v367_v44, 0.0  ;;  %v475_v22 = vld [vmem:[%s1215_s5 + $0x10] sm:$0xff] }
  0xef   :  { %v390_v57 = vmul.f32 0.25, %v378_v46  ;;  %v393_v58 = vmul.f32 %v1096_v47, %v1096_v47  ;;  %806 = vmatpush3.msra.mxu0 %v475_v22 }
  0xf0   :  { %v380_v62 = vadd.f32 %v377_v53, %v359_v51  ;;  %v1108_v63 = vmul.f32 0.25, %v374_v52  ;;  %v373_v1 = vadd.f32 %v370_v55, %v352_v32  ;;  %v376_v2 = vmul.f32 %v370_v55, %v370_v55  ;;  %807 = vmatprep.subr.mxu0 %v841_v0 }
  0xf1   :  { %v396_v5 = vsub.f32 %v390_v57, %v393_v58  ;;  %v382_v7 = vmax.f32 %v361_v50, %v370_v55  ;;  %v385_v17 = vmin.f32 %v364_v59, %v370_v55  ;;  %808 = vmatpush3.msra.mxu0 %v474_v19  ;;  %v383_v32 = vmax.f32 %v362_v26, %v1090_v43 }
  0xf2   :  { %v392_v10 = vmul.f32 0.25, %v380_v62  ;;  %v395_v11 = vmul.f32 %v1108_v63, %v1108_v63  ;;  %v379_v12 = vadd.f32 %v376_v2, %v358_v42  ;;  %v1123_v13 = vmul.f32 0.25, %v373_v1  ;;  %809 = vmatprep.subr.mxu0 %v841_v0 }
  0xf3   :  { %v399_v15 = vmax.f32 %v396_v5, 0.0  ;;  %v825_v16 = vpack.i.bf16 %v382_v7, %v381_v6  ;;  %v830_v25 = vpack.i.bf16 %v385_v17, %v384_v20  ;;  %810 = vmatpush3.msra.mxu0 %v473_v34  ;;  %v344_v51 = vmin.f32 %v1042_v60, %v1036_v56 }
  0xf4   :  { %v398_v54 = vsub.f32 %v392_v10, %v395_v11  ;;  %v391_v3 = vmul.f32 0.25, %v379_v12  ;;  %v394_v14 = vmul.f32 %v1123_v13, %v1123_v13 }
  0xf5   :  { %v402_v18 = vadd.f32 1e-05, %v399_v15  ;;  %826 = vrot.lane.b32.xlu0 %v825_v16, %s843_s30  ;;  %v365_v42 = vmin.f32 %v344_v51, %v1080_v29 }
  0xf6   :  { %v401_v23 = vmax.f32 %v398_v54, 0.0  ;;  %v397_v24 = vsub.f32 %v391_v3, %v394_v14  ;;  %v615_v3 = vlaneseq }
  0xf7   :  { %835 = vrsqrt.f32 %v402_v18  ;;  %vm407_vm3 = vcmp.eq.f32.partialorder %v402_v18, inf  ;;  %v410_v38 = vand.u32 2147483648, %v402_v18  ;;  %vm409_vm4 = vcmp.eq.f32.partialorder %v402_v18, 0.0 }
  0xf8   :  { %v404_v27 = vadd.f32 1e-05, %v401_v23  ;;  %v400_v28 = vmax.f32 %v397_v24, 0.0  ;;  %v386_v58 = vmin.f32 %v365_v42, %v1090_v43  ;;  %v616_v20 = vshrl.u32 %v615_v3, 7 }
  0xf9   :  { %831 = vrot.lane.b32.xlu0 %v830_v25, %s844_s1 }
  0xfa   :  { %v403_v30 = vadd.f32 1e-05, %v400_v28  ;;  %837 = vrsqrt.f32 %v404_v27  ;;  %vm421_vm5 = vcmp.eq.f32.partialorder %v404_v27, inf  ;;  %v424_v46 = vand.u32 2147483648, %v404_v27 }
  0xfb   :  { %vm423_vm6 = vcmp.eq.f32.partialorder %v404_v27, 0.0  ;;  %v618_v24 = vadd.s32 16, %v616_v20 }
  0xfc   :  { %839 = vrsqrt.f32 %v403_v30  ;;  %vm414_vm7 = vcmp.eq.f32.partialorder %v403_v30, inf  ;;  %v417_v53 = vand.u32 2147483648, %v403_v30  ;;  %vm416_vm8 = vcmp.eq.f32.partialorder %v403_v30, 0.0 }
  0xfd   :  { %433 = vrot.lane.b32.xlu0 %v383_v32, %s843_s30  ;;  %vm625_vm12 = vcmp.lt.s32.totalorder %v618_v24, 20 }
 0x104   :  { %v836_v36 = vpop.eup %835 }
 0x105   :  { %v406_v37 = vmul.f32 %v836_v36, %v402_v18 }
 0x107   :  { %v838_v39 = vpop.eup %837  ;;  %v408_v40 = vsel %vm407_vm3, %v402_v18, %v406_v37 }
 0x108   :  { %v411_v41 = vsel %vm409_vm4, %v410_v38, %v408_v40  ;;  %v420_v44 = vmul.f32 %v838_v39, %v404_v27 }
 0x109   :  { %v840_v45 = vpop.eup %839  ;;  %453 = vrot.lane.b32.xlu1 %v411_v41, %s845_s13 }
 0x10a   :  { %v422_v48 = vsel %vm421_vm5, %v404_v27, %v420_v44  ;;  %v413_v50 = vmul.f32 %v840_v45, %v403_v30 }
 0x10b   :  { %v425_v52 = vsel %vm423_vm6, %v424_v46, %v422_v48 }
 0x10c   :  { %457 = vrot.lane.b32.xlu0 %v425_v52, %s845_s13  ;;  %v415_v55 = vsel %vm414_vm7, %v403_v30, %v413_v50 }
 0x10d   :  { %v418_v57 = vsel %vm416_vm8, %v417_v53, %v415_v55 }
 0x10e   :  { %455 = vrot.lane.b32.xlu1 %v418_v57, %s845_s13 }
 0x112   :  { %445 = vrot.lane.b32.xlu1 %v386_v58, %s844_s1 }
 0x167   :  { %v827_v59 = vpop.permute.xlu0 %826 }
 0x168   :  { %v828_v62 = vunpack.i.l.bf16 %v827_v59  ;;  %v829_v1 = vunpack.i.h.bf16 %v827_v59 }
 0x16a   :  { %v462_v60 = vsel %vm35_vm1, %v1096_v47, %v828_v62  ;;  %v463_v43 = vsel %vm35_vm1, %v1123_v13, %v829_v1 }
 0x16b   :  { %v832_v61 = vpop.permute.xlu0 %831 }
 0x16c   :  { %v833_v56 = vunpack.i.l.bf16 %v832_v61  ;;  %v834_v4 = vunpack.i.h.bf16 %v832_v61 }
 0x16e   :  { %v466_v29 = vsel %vm465_vm9, %v462_v60, %v833_v56  ;;  %v467_v7 = vsel %vm465_vm9, %v463_v43, %v834_v4 }
 0x16f   :  { %v434_v8 = vpop.permute.xlu0 %433 }
 0x170   :  { %v464_v9 = vsel %vm35_vm1, %v1108_v63, %v434_v8 }
 0x17b   :  { %v454_v2 = vpop.permute.xlu1 %453 }
 0x17c   :  { %v470_v5 = vsel %vm469_vm10, %v466_v29, %v454_v2 }
 0x17d   :  { %812 = vmatmul.mubr.f32.vlgmr.msra.gmra.mxu0 %v470_v5 }
 0x17e   :  { %814 = vmatprep.mubr.msk.f32.mxu0 %vm842_vm0, %v841_v0  ;;  %v458_v11 = vpop.permute.xlu0 %457 }
 0x180   :  { %v456_v6 = vpop.permute.xlu1 %455 }
 0x181   :  { %v471_v47 = vsel %vm469_vm10, %v467_v7, %v456_v6 }
 0x182   :  { %815 = vmatmul.mubr.f32.gmra.mxu0 %v471_v47 }
 0x183   :  { %817 = vmatprep.mubr.msk.f32.mxu0 %vm842_vm0, %v841_v0  ;;  %v687_v0 = vld [vmem:[%s1217_s6] ss:$0 sm:$0xff] }
 0x184   :  { %v446_v10 = vpop.permute.xlu1 %445 }
 0x185   :  { %v468_v12 = vsel %vm465_vm9, %v464_v9, %v446_v10 }
 0x186   :  { %v472_v15 = vsel %vm469_vm10, %v468_v12, %v458_v11 }
 0x187   :  { %818 = vmatmul.mubr.f32.gmra.mxu0 %v472_v15 }
 0x23d   :  { %v555_v13 = vpop.f32.mrf.mxu0 }
 0x23e   :  { %572 = vrot.lane.b32.xlu1 %v555_v13, %s843_s30 }
 0x23f   :  { %v813_v16 = vpop.f32.mrf.mxu0 }
 0x242   :  { %v560_v17 = vpop.f32.mrf.mxu0 }
 0x243   :  { %574 = vrot.lane.b32.xlu0 %v560_v17, %s843_s30 }
 0x244   :  { %v816_v49 = vpop.f32.mrf.mxu0 }
 0x247   :  { %590 = vrot.lane.b32.xlu0 %v687_v0, %s843_s30  ;;  %v565_v63 = vpop.f32.mrf.mxu0 }
 0x248   :  { %576 = vrot.lane.b32.xlu1 %v565_v63, %s843_s30 }
 0x249   :  { %v819_v54 = vpop.f32.mrf.mxu0 }
 0x2b0   :  { %v573_v14 = vpop.permute.xlu1 %572 }
 0x2b1   :  { %v581_v21 = vadd.f32 %v573_v14, %v1014_v31 }
 0x2b5   :  { %v575_v18 = vpop.permute.xlu0 %574 }
 0x2b6   :  { %v582_v22 = vadd.f32 %v575_v18, %v1016_v33 }
 0x2b9   :  { %v591_v23 = vpop.permute.xlu0 %590 }
 0x2ba   :  { %v593_v25 = vadd.f32 %v591_v23, %v581_v21  ;;  %v594_v26 = vadd.f32 %v591_v23, %v582_v22  ;;  %v577_v19 = vpop.permute.xlu1 %576 }
 0x2bb   :  { %v583_v27 = vadd.f32 %v577_v19, %v1018_v35 }
 0x2bc   :  { %v597_v28 = vmax.f32 %v594_v26, 0.0  ;;  %v596_v30 = vmax.f32 %v593_v25, 0.0 }
 0x2bd   :  { %v595_v32 = vadd.f32 %v591_v23, %v583_v27 }
 0x2be   :  { %604 = vrot.lane.b32.xlu0 %v597_v28, %s845_s13  ;;  %v631_v34 = vsel %vm629_vm11, %v597_v28, 0.0  ;;  %v642_v36 = vmul.f32 %v597_v28, %v597_v28  ;;  %602 = vrot.lane.b32.xlu1 %v596_v30, %s845_s13  ;;  %v630_v31 = vsel %vm629_vm11, %v596_v30, 0.0  ;;  %v641_v33 = vmul.f32 %v596_v30, %v596_v30 }
 0x2bf   :  { %v598_v37 = vmax.f32 %v595_v32, 0.0  ;;  %v632_v40 = vadd.f32 %v631_v34, %v630_v31 }
 0x2c0   :  { %v645_v38 = vsel %vm629_vm11, %v642_v36, 0.0  ;;  %v644_v39 = vsel %vm629_vm11, %v641_v33, 0.0 }
 0x2c1   :  { %v628_v35 = vsel %vm625_vm12, %v598_v37, 0.0  ;;  %v646_v46 = vadd.f32 %v645_v38, %v644_v39 }
 0x2c2   :  { %v633_v41 = vsel %vm629_vm11, %v628_v35, 0.0  ;;  %v643_v44 = vmul.f32 %v628_v35, %v628_v35  ;;  %606 = vrot.lane.b32.xlu1 %v598_v37, %s845_s13 }
 0x2c3   :  { %v634_v45 = vadd.f32 %v633_v41, %v632_v40 }
 0x2c4   :  { %v647_v48 = vsel %vm629_vm11, %v643_v44, 0.0 }
 0x2c5   :  { %v635_v50 = vrot.slane %v634_v45, 4  ;;  %v648_v51 = vadd.f32 %v647_v48, %v646_v46 }
 0x2c7   :  { %v636_v52 = vadd.f32 %v635_v50, %v634_v45  ;;  %v649_v53 = vrot.slane %v648_v51, 4 }
 0x2c9   :  { %v637_v55 = vrot.slane %v636_v52, 2  ;;  %v650_v42 = vadd.f32 %v649_v53, %v648_v51 }
 0x2cb   :  { %v638_v57 = vadd.f32 %v637_v55, %v636_v52  ;;  %v651_v58 = vrot.slane %v650_v42, 2 }
 0x2cd   :  { %v639_v59 = vrot.slane %v638_v57, 1  ;;  %v652_v61 = vadd.f32 %v651_v58, %v650_v42 }
 0x2cf   :  { %v653_v62 = vrot.slane %v652_v61, 1  ;;  %v640_v56 = vadd.f32 %v639_v59, %v638_v57 }
 0x2d1   :  { %v654_v60 = vadd.f32 %v653_v62, %v652_v61 }
 0x2d3   :  { %v656_v1 = vsel %vm655_vm13, %v640_v56, %v654_v60 }
 0x2d4   :  { %658 = vrot.lane.b32.xlu0 %v656_v1, %s845_s13 }
 0x330   :  { %v605_v2 = vpop.permute.xlu0 %604  ;;  %v603_v29 = vpop.permute.xlu1 %602 }
 0x331   :  { %612 = vst.msk [vmem:[%s1218_s7 + $0x8] sm:$0xff] %vm35_vm1, %v605_v2  ;;  %611 = vst.msk [vmem:[%s1218_s7] sm:$0xff] %vm35_vm1, %v603_v29 }
 0x334   :  { %v607_v4 = vpop.permute.xlu1 %606 }
 0x335   :  { %613 = vst.msk [vmem:[%s1218_s7 + $0x10] sm:$0xff] %vm35_vm1, %v607_v4 }
 0x346   :  { %v659_v5 = vpop.permute.xlu0 %658 }
 0x347   :  { %662 = vst.msk [vmem:[%s1219_s8] sm:$0x3] %vm661_vm14, %v659_v5 }

</bundles_post_ra>
